<compile_context>
chip_gen: v7x
topology: tpu7x:2x2x1
jax: 0.10.0
libtpu: 0.0.40
codegen_flags: <defaults>
</compile_context>

<pallas_src>
import jax
import jax.numpy as jnp
from jax.experimental import pallas as pl
from jax.experimental.pallas import tpu as pltpu


INPUT_DIM = 3
HIDDEN_DIM = 20
OUTPUT_DIM = 2

IN_PAD = 8     # fc1 contraction dim padded to a full f32 sublane group
HID_PAD = 128  # hidden lane width (h1/h2) -> full-lane MXU tiles
OUT_PAD = 8    # output lane width (OUTPUT_DIM padded) -> 16x less writeback vs 128


def _round_up(x, m):
    return ((x + m - 1) // m) * m


def fnn_kernel(x_ref, w1_ref, w2_ref, w3_ref, b1_ref, b2_ref, b3_ref, o_ref):
    # x: (TB, IN_PAD) f32; w1: (IN_PAD, HID_PAD) bf16; w2: (HID_PAD, HID_PAD) bf16;
    # w3: (HID_PAD, OUT_PAD) bf16; b*: f32; o: (TB, OUT_PAD) f32.
    x = x_ref[...].astype(jnp.bfloat16)

    # fc1 + sigmoid (bf16 MXU dot, f32 accumulate; bias/activation in f32 on VPU+EUP)
    h1 = jax.nn.sigmoid(
        jnp.dot(x, w1_ref[...], preferred_element_type=jnp.float32) + b1_ref[...])

    # fc2 + sigmoid: padded rows (>= HIDDEN_DIM) of w2 are zero, so the
    # sigmoid(0)=0.5 padded lanes of h1 contribute nothing.
    h2 = jax.nn.sigmoid(
        jnp.dot(h1.astype(jnp.bfloat16), w2_ref[...],
                preferred_element_type=jnp.float32) + b2_ref[...])

    # fc3 (logits, no activation): w3's padded rows are zero and its padded
    # output lanes are zero, so lanes >= OUTPUT_DIM of the stored block are 0.
    o_ref[...] = (jnp.dot(h2.astype(jnp.bfloat16), w3_ref[...],
                          preferred_element_type=jnp.float32)
                  + b3_ref[...]).astype(o_ref.dtype)


def pack_params(w1, b1, w2, b2, w3, b3):
    """Zero-pad the 3 layers to MXU/lane-friendly slabs.

    Weights arrive pre-transposed as (in, out); biases as (1, out).
    NOTE: the padded-lane math relies on these zero rows/cols -- keep them zero
    if the packing is ever changed.
    """
    W1 = jnp.zeros((IN_PAD, HID_PAD), jnp.float32).at[:INPUT_DIM, :HIDDEN_DIM].set(w1)
    W2 = jnp.zeros((HID_PAD, HID_PAD), jnp.float32).at[:HIDDEN_DIM, :HIDDEN_DIM].set(w2)
    W3 = jnp.zeros((HID_PAD, OUT_PAD), jnp.float32).at[:HIDDEN_DIM, :OUTPUT_DIM].set(w3)
    B1 = jnp.zeros((1, HID_PAD), jnp.float32).at[0, :HIDDEN_DIM].set(b1.reshape(-1))
    B2 = jnp.zeros((1, HID_PAD), jnp.float32).at[0, :HIDDEN_DIM].set(b2.reshape(-1))
    B3 = jnp.zeros((1, OUT_PAD), jnp.float32).at[0, :OUTPUT_DIM].set(b3.reshape(-1))
    # bf16 weights: halves the resident slabs and runs the dots at MXU bf16 rate
    return (W1.astype(jnp.bfloat16), W2.astype(jnp.bfloat16),
            W3.astype(jnp.bfloat16), B1, B2, B3)


def simple_fnn_forward(x, params, *, tb=2048):
    """x: (B, INPUT_DIM) float32.  Returns (B, OUTPUT_DIM) float32 logits."""
    W1, W2, W3, B1, B2, B3 = params
    n_rows = x.shape[0]

    # --- batch tiling --------------------------------------------------------
    n8 = _round_up(max(n_rows, 1), 8)          # sublane-aligned row count
    tile = min(_round_up(tb, 8), n8)
    num_tiles = -(-n8 // tile)
    if num_tiles > 1 and num_tiles % 2:
        num_tiles += 1                         # even tile count: balances v7x's 2 TCs
    n_pad = num_tiles * tile

    # pad batch tail with zero rows and pad fc1 input to 8 sublane-aligned columns
    xp = jnp.zeros((n_pad, IN_PAD), jnp.float32)
    xp = xp.at[:n_rows, :INPUT_DIM].set(x)
    # TODO(synk): for very large B, handle the tail inside the kernel (scalar row
    # count + masked final-tile store) to avoid this extra HBM pass over x.

    weight_bytes = ((W1.size + W2.size + W3.size) * 2
                    + (B1.size + B2.size + B3.size) * 4)
    cost = pl.CostEstimate(
        flops=2 * n_pad * (IN_PAD * HID_PAD + HID_PAD * HID_PAD + HID_PAD * OUT_PAD),
        transcendentals=2 * n_pad * HID_PAD,
        bytes_accessed=n_pad * (IN_PAD + OUT_PAD) * 4 + weight_bytes,
    )

    out = pl.pallas_call(
        fnn_kernel,
        out_shape=jax.ShapeDtypeStruct((n_pad, OUT_PAD), jnp.float32),
        grid_spec=pltpu.PrefetchScalarGridSpec(
            num_scalar_prefetch=0,
            grid=(num_tiles,),
            in_specs=[
                # batch-tiled input (last dim == full array dim -> (8,128) rule ok)
                pl.BlockSpec((tile, IN_PAD), lambda i: (i, 0)),
                # whole-array weight/bias blocks, constant index -> DMA'd once,
                # VMEM-resident across all batch tiles
                pl.BlockSpec((IN_PAD, HID_PAD), lambda i: (0, 0)),
                pl.BlockSpec((HID_PAD, HID_PAD), lambda i: (0, 0)),
                pl.BlockSpec((HID_PAD, OUT_PAD), lambda i: (0, 0)),
                pl.BlockSpec((1, HID_PAD), lambda i: (0, 0)),
                pl.BlockSpec((1, HID_PAD), lambda i: (0, 0)),
                pl.BlockSpec((1, OUT_PAD), lambda i: (0, 0)),
            ],
            out_specs=pl.BlockSpec((tile, OUT_PAD), lambda i: (i, 0)),
        ),
        compiler_params=pltpu.CompilerParams(
            # independent batch tiles; only moves the needle on v7x (2 TCs)
            dimension_semantics=("parallel",)),
        cost_estimate=cost,
    )(xp, W1, W2, W3, B1, B2, B3)

    return out[:n_rows, :OUTPUT_DIM]


def init_linear_params(key, in_dim, out_dim):
    """Deterministic init mirroring torch.nn.Linear's U(-1/sqrt(in), 1/sqrt(in)).

    Returns weight already transposed to (in_dim, out_dim) and bias as (1, out_dim).
    """
    kw, kb = jax.random.split(key)
    bound = 1.0 / jnp.sqrt(jnp.float32(in_dim))
    w = jax.random.uniform(kw, (in_dim, out_dim), jnp.float32, -bound, bound)
    b = jax.random.uniform(kb, (1, out_dim), jnp.float32, -bound, bound)
    return w, b


if __name__ == "__main__":
    key = jax.random.PRNGKey(0)
    kx, k1, k2, k3 = jax.random.split(key, 4)

    batch = 10  # not a multiple of 8 -> exercises batch-tail + column padding
    x = jax.random.normal(kx, (batch, INPUT_DIM), jnp.float32)

    w1, b1 = init_linear_params(k1, INPUT_DIM, HIDDEN_DIM)
    w2, b2 = init_linear_params(k2, HIDDEN_DIM, HIDDEN_DIM)
    w3, b3 = init_linear_params(k3, HIDDEN_DIM, OUTPUT_DIM)

    params = pack_params(w1, b1, w2, b2, w3, b3)

    out = simple_fnn_forward(x, params)
    out = jax.block_until_ready(out)

    # pure-JAX f32 reference of the same math (kernel dots are bf16 -> loose tol)
    ref = jax.nn.sigmoid(x @ w1 + b1)
    ref = jax.nn.sigmoid(ref @ w2 + b2)
    ref = ref @ w3 + b3
    assert out.shape == (batch, OUTPUT_DIM)
    assert jnp.allclose(out, ref, atol=3e-2, rtol=3e-2), (out, ref)

    print("KERNEL_OK")
</pallas_src>

<mosaic_0001>
module attributes {stable_mosaic.version = 11 : i64} {
  func.func @fnn_kernel(%arg0: i32, %arg1: memref<16x8xf32, #tpu.memory_space<vmem>>, %arg2: memref<8x128xbf16, #tpu.memory_space<vmem>>, %arg3: memref<128x128xbf16, #tpu.memory_space<vmem>>, %arg4: memref<128x8xbf16, #tpu.memory_space<vmem>>, %arg5: memref<1x128xf32, #tpu.memory_space<vmem>>, %arg6: memref<1x128xf32, #tpu.memory_space<vmem>>, %arg7: memref<1x8xf32, #tpu.memory_space<vmem>>, %arg8: memref<16x8xf32, #tpu.memory_space<vmem>>) attributes {dimension_semantics = [#tpu.dimension_semantics<parallel>], iteration_bounds = array<i64: 1>, scalar_prefetch = 0 : i64, scratch_operands = 0 : i64, tpu.core_type = #tpu.core_type<tc>, window_params = [{transform_indices = @transform_0, window_bounds = array<i64: 16, 8>}, {pipeline_mode = #tpu.pipeline_mode<synchronous>, transform_indices = @transform_1, window_bounds = array<i64: 8, 128>}, {pipeline_mode = #tpu.pipeline_mode<synchronous>, transform_indices = @transform_2, window_bounds = array<i64: 128, 128>}, {pipeline_mode = #tpu.pipeline_mode<synchronous>, transform_indices = @transform_3, window_bounds = array<i64: 128, 8>}, {pipeline_mode = #tpu.pipeline_mode<synchronous>, transform_indices = @transform_4, window_bounds = array<i64: 1, 128>}, {pipeline_mode = #tpu.pipeline_mode<synchronous>, transform_indices = @transform_5, window_bounds = array<i64: 1, 128>}, {pipeline_mode = #tpu.pipeline_mode<synchronous>, transform_indices = @transform_6, window_bounds = array<i64: 1, 8>}, {transform_indices = @transform_7, window_bounds = array<i64: 16, 8>}]} {
    %c0 = arith.constant 0 : index
    %c0_0 = arith.constant 0 : index
    %0 = vector.load %arg1[%c0, %c0_0] : memref<16x8xf32, #tpu.memory_space<vmem>>, vector<16x8xf32>
    %1 = arith.truncf %0 : vector<16x8xf32> to vector<16x8xbf16>
    %c0_1 = arith.constant 0 : index
    %c0_2 = arith.constant 0 : index
    %2 = vector.load %arg2[%c0_1, %c0_2] : memref<8x128xbf16, #tpu.memory_space<vmem>>, vector<8x128xbf16>
    %cst = arith.constant dense<0.000000e+00> : vector<16x128xf32>
    %3 = tpu.matmul %1, %2, %cst {dimension_numbers = #tpu.dot_dimension_numbers<[1], [0], [0], [1], [0, 0, 1, 1], [], []>} : vector<16x8xbf16>, vector<8x128xbf16>, vector<16x128xf32> -> vector<16x128xf32>
    %c0_3 = arith.constant 0 : index
    %c0_4 = arith.constant 0 : index
    %4 = vector.load %arg5[%c0_3, %c0_4] : memref<1x128xf32, #tpu.memory_space<vmem>>, vector<1x128xf32>
    %5 = vector.broadcast %4 : vector<1x128xf32> to vector<16x128xf32>
    %6 = arith.addf %3, %5 : vector<16x128xf32>
    %7 = arith.negf %6 : vector<16x128xf32>
    %8 = math.exp %7 : vector<16x128xf32>
    %cst_5 = arith.constant 1.000000e+00 : f32
    %9 = vector.broadcast %cst_5 : f32 to vector<16x128xf32>
    %10 = arith.addf %9, %8 : vector<16x128xf32>
    %11 = arith.divf %9, %10 : vector<16x128xf32>
    %12 = arith.truncf %11 : vector<16x128xf32> to vector<16x128xbf16>
    %c0_6 = arith.constant 0 : index
    %c0_7 = arith.constant 0 : index
    %13 = vector.load %arg3[%c0_6, %c0_7] : memref<128x128xbf16, #tpu.memory_space<vmem>>, vector<128x128xbf16>
    %cst_8 = arith.constant dense<0.000000e+00> : vector<16x128xf32>
    %14 = tpu.matmul %12, %13, %cst_8 {dimension_numbers = #tpu.dot_dimension_numbers<[1], [0], [0], [1], [0, 0, 1, 1], [], []>} : vector<16x128xbf16>, vector<128x128xbf16>, vector<16x128xf32> -> vector<16x128xf32>
    %c0_9 = arith.constant 0 : index
    %c0_10 = arith.constant 0 : index
    %15 = vector.load %arg6[%c0_9, %c0_10] : memref<1x128xf32, #tpu.memory_space<vmem>>, vector<1x128xf32>
    %16 = vector.broadcast %15 : vector<1x128xf32> to vector<16x128xf32>
    %17 = arith.addf %14, %16 : vector<16x128xf32>
    %18 = arith.negf %17 : vector<16x128xf32>
    %19 = math.exp %18 : vector<16x128xf32>
    %cst_11 = arith.constant 1.000000e+00 : f32
    %20 = vector.broadcast %cst_11 : f32 to vector<16x128xf32>
    %21 = arith.addf %20, %19 : vector<16x128xf32>
    %22 = arith.divf %20, %21 : vector<16x128xf32>
    %23 = arith.truncf %22 : vector<16x128xf32> to vector<16x128xbf16>
    %c0_12 = arith.constant 0 : index
    %c0_13 = arith.constant 0 : index
    %24 = vector.load %arg4[%c0_12, %c0_13] : memref<128x8xbf16, #tpu.memory_space<vmem>>, vector<128x8xbf16>
    %cst_14 = arith.constant dense<0.000000e+00> : vector<16x8xf32>
    %25 = tpu.matmul %23, %24, %cst_14 {dimension_numbers = #tpu.dot_dimension_numbers<[1], [0], [0], [1], [0, 0, 1, 1], [], []>} : vector<16x128xbf16>, vector<128x8xbf16>, vector<16x8xf32> -> vector<16x8xf32>
    %c0_15 = arith.constant 0 : index
    %c0_16 = arith.constant 0 : index
    %26 = vector.load %arg7[%c0_15, %c0_16] : memref<1x8xf32, #tpu.memory_space<vmem>>, vector<1x8xf32>
    %27 = vector.broadcast %26 : vector<1x8xf32> to vector<16x8xf32>
    %28 = arith.addf %25, %27 : vector<16x8xf32>
    %c0_17 = arith.constant 0 : index
    %c0_18 = arith.constant 0 : index
    %29 = vector.load %arg8[%c0_17, %c0_18] : memref<16x8xf32, #tpu.memory_space<vmem>>, vector<16x8xf32>
    tpu.vector_store %arg8[%c0_17, %c0_18], %28 {strides = array<i32>} : memref<16x8xf32, #tpu.memory_space<vmem>>, vector<16x8xf32>,
    return
  }
  func.func @transform_0(%arg0: i32) -> (i32, i32) {
    %c0_i32 = arith.constant 0 : i32
    %c0_i32_0 = arith.constant 0 : i32
    return %arg0, %c0_i32 : i32, i32
  }
  func.func @transform_1(%arg0: i32) -> (i32, i32) {
    %c0_i32 = arith.constant 0 : i32
    %c0_i32_0 = arith.constant 0 : i32
    %c0_i32_1 = arith.constant 0 : i32
    return %c0_i32, %c0_i32_0 : i32, i32
  }
  func.func @transform_2(%arg0: i32) -> (i32, i32) {
    %c0_i32 = arith.constant 0 : i32
    %c0_i32_0 = arith.constant 0 : i32
    %c0_i32_1 = arith.constant 0 : i32
    return %c0_i32, %c0_i32_0 : i32, i32
  }
  func.func @transform_3(%arg0: i32) -> (i32, i32) {
    %c0_i32 = arith.constant 0 : i32
    %c0_i32_0 = arith.constant 0 : i32
    %c0_i32_1 = arith.constant 0 : i32
    return %c0_i32, %c0_i32_0 : i32, i32
  }
  func.func @transform_4(%arg0: i32) -> (i32, i32) {
    %c0_i32 = arith.constant 0 : i32
    %c0_i32_0 = arith.constant 0 : i32
    %c0_i32_1 = arith.constant 0 : i32
    return %c0_i32, %c0_i32_0 : i32, i32
  }
  func.func @transform_5(%arg0: i32) -> (i32, i32) {
    %c0_i32 = arith.constant 0 : i32
    %c0_i32_0 = arith.constant 0 : i32
    %c0_i32_1 = arith.constant 0 : i32
    return %c0_i32, %c0_i32_0 : i32, i32
  }
  func.func @transform_6(%arg0: i32) -> (i32, i32) {
    %c0_i32 = arith.constant 0 : i32
    %c0_i32_0 = arith.constant 0 : i32
    %c0_i32_1 = arith.constant 0 : i32
    return %c0_i32, %c0_i32_0 : i32, i32
  }
  func.func @transform_7(%arg0: i32) -> (i32, i32) {
    %c0_i32 = arith.constant 0 : i32
    %c0_i32_0 = arith.constant 0 : i32
    return %arg0, %c0_i32 : i32, i32
  }
}

</mosaic_0001>

<bundles_post_ra>
// kernel: tpu_custom_call.1
= control target key start
LH: loop header
LB: loop body
LE: loop exit
PB: predicated region body
PF: predicated region fallthrough
CT: control target
= control target key end

     0   :  { %vm42_vm0 = vcmask 1043456   ;;  %v467_v0 = vmov 0.0   ;;  %vm468_vm1 = vmmov 0   ;;  %vm38_vm2 = vcmask 64512   ;;  %s604_s1 = inlined_call_operand.vmem [shape: bf16[8,128], index: 1, kind: input, shape index: {}]   ;;  %s605_s0 = inlined_call_operand.vmem [shape: f32[16,8], index: 0, kind: input, shape index: {}]   ;;  %s606_s2 = inlined_call_operand.vmem [shape: bf16[128,128], index: 2, kind: input, shape index: {}]   ;;  %s607_s4 = inlined_call_operand.vmem [shape: f32[1,128], index: 4, kind: input, shape index: {}]   ;;  %s608_s3 = inlined_call_operand.vmem [shape: bf16[128,8], index: 3, kind: input, shape index: {}]   ;;  %s609_s5 = inlined_call_operand.vmem [shape: f32[1,128], index: 5, kind: input, shape index: {}]   ;;  %s610_s6 = inlined_call_operand.vmem [shape: f32[1,8], index: 6, kind: input, shape index: {}]   ;;  %s611_s7 = inlined_call_operand.vmem [shape: f32[16,8], index: 7, kind: output, shape index: {}]  }
   0x1   :  { %387 = vmatprep.subr.bf16.mxu0 %v467_v0  ;;  %v30_v1 = vld [vmem:[%s604_s1] sm:$0xf]  ;;  %389 = vmatprep.mubr.msk.bf16.mxu0 %vm468_vm1, %v467_v0  ;;  %v28_v3 = vld [vmem:[%s605_s0 + $0x8] sm:$0xff]  ;;  %v437_v8 = vld [vmem:[%s606_s2 + $0x10] sm:$0xff]  }
   0x2   :  { %v27_v2 = vld [vmem:[%s605_s0] sm:$0xff]  ;;  %v44_v4 = vsel %vm42_vm0, %v30_v1, 0  ;;  %393 = vmatprep.subr.bf16.mxu1 %v467_v0  ;;  %409 = vmatprep.mubr.msk.bf16.mxu1 %vm468_vm1, %v467_v0  ;;  %v436_v7 = vld [vmem:[%s606_s2 + $0x8] sm:$0xff]   ;;  %v438_v9 = vld [vmem:[%s606_s2 + $0x18] sm:$0xff]  }
   0x3   :  { %v29_v5 = vpack.c.bf16 %v28_v3, %v27_v2  ;;  %388 = vmatpush3.bf16.msra.mxu0 %v44_v4  ;;  %v435_v6 = vld [vmem:[%s606_s2] sm:$0xff]   ;;  %v440_v11 = vld [vmem:[%s606_s2 + $0x28] sm:$0xff]   ;;  %v441_v12 = vld [vmem:[%s606_s2 + $0x30] sm:$0xff]  }
   0x4   :  { %413 = vmatprep.subr.bf16.mxu0 %v467_v0  ;;  %394 = vmatpush3.bf16.msra.mxu1 %v435_v6  ;;  %v439_v10 = vld [vmem:[%s606_s2 + $0x20] sm:$0xff]   ;;  %v442_v13 = vld [vmem:[%s606_s2 + $0x38] sm:$0xff]   ;;  %v444_v31 = vld [vmem:[%s608_s3 + $0x8] sm:$0xff]  }
   0x5   :  { %395 = vmatprep.subr.bf16.mxu1 %v467_v0  ;;  %v343_v14 = vld [vmem:[%s607_s4] ss:$0 sm:$0xff]  ;;  %v445_v32 = vld [vmem:[%s608_s3 + $0x10] sm:$0xff]   ;;  %v446_v33 = vld [vmem:[%s608_s3 + $0x18] sm:$0xff]  }
   0x6   :  { %390 = vmatmul.mubr.msk.bf16.vlgmr.msra.gmra.mrb[0].mxu0 %vm38_vm2, %v29_v5  ;;  %v443_v30 = vld [vmem:[%s608_s3] sm:$0xff]   ;;  %v448_v35 = vld [vmem:[%s608_s3 + $0x28] sm:$0xff]   ;;  %v449_v36 = vld [vmem:[%s608_s3 + $0x30] sm:$0xff]  }
   0x7   :  { %429 = vmatprep.mubr.msk.bf16.mxu0 %vm468_vm1, %v467_v0  ;;  %414 = vmatpush3.bf16.msra.mxu0 %v443_v30  ;;  %v447_v34 = vld [vmem:[%s608_s3 + $0x20] sm:$0xff]   ;;  %v450_v37 = vld [vmem:[%s608_s3 + $0x38] sm:$0xff]  }
   0x8   :  { %396 = vmatpush3.bf16.msra.mxu1 %v436_v7  ;;  %415 = vmatprep.subr.bf16.mxu0 %v467_v0  ;;  %v347_v38 = vld [vmem:[%s609_s5] ss:$0 sm:$0xff] }
   0x9   :  { %397 = vmatprep.subr.bf16.mxu1 %v467_v0  ;;  %v358_v54 = vld [vmem:[%s610_s6] ss:$0 sm:$0xff] }
   0xb   :  { %416 = vmatpush3.bf16.msra.mxu0 %v444_v31 }
   0xc   :  { %398 = vmatpush3.bf16.msra.mxu1 %v437_v8  ;;  %417 = vmatprep.subr.bf16.mxu0 %v467_v0 }
   0xd   :  { %399 = vmatprep.subr.bf16.mxu1 %v467_v0 }
   0xf   :  { %418 = vmatpush3.bf16.msra.mxu0 %v445_v32 }
  0x10   :  { %400 = vmatpush3.bf16.msra.mxu1 %v438_v9  ;;  %419 = vmatprep.subr.bf16.mxu0 %v467_v0 }
  0x11   :  { %401 = vmatprep.subr.bf16.mxu1 %v467_v0 }
  0x13   :  { %420 = vmatpush3.bf16.msra.mxu0 %v446_v33 }
  0x14   :  { %402 = vmatpush3.bf16.msra.mxu1 %v439_v10  ;;  %421 = vmatprep.subr.bf16.mxu0 %v467_v0 }
  0x15   :  { %403 = vmatprep.subr.bf16.mxu1 %v467_v0 }
  0x17   :  { %422 = vmatpush3.bf16.msra.mxu0 %v447_v34 }
  0x18   :  { %404 = vmatpush3.bf16.msra.mxu1 %v440_v11  ;;  %423 = vmatprep.subr.bf16.mxu0 %v467_v0 }
  0x19   :  { %405 = vmatprep.subr.bf16.mxu1 %v467_v0 }
  0x1b   :  { %424 = vmatpush3.bf16.msra.mxu0 %v448_v35 }
  0x1c   :  { %406 = vmatpush3.bf16.msra.mxu1 %v441_v12  ;;  %425 = vmatprep.subr.bf16.mxu0 %v467_v0 }
  0x1d   :  { %407 = vmatprep.subr.bf16.mxu1 %v467_v0 }
  0x1f   :  { %426 = vmatpush3.bf16.msra.mxu0 %v449_v36 }
  0x20   :  { %408 = vmatpush3.bf16.msra.mxu1 %v442_v13  ;;  %427 = vmatprep.subr.bf16.mxu0 %v467_v0 }
  0x23   :  { %428 = vmatpush3.bf16.msra.mxu0 %v450_v37 }
  0xd9   :  { %v80_v15 = vpop.f32.mrb[0].mxu0 }
  0xda   :  { %v81_v16 = vadd.f32 %v343_v14, %v80_v15  ;;  %v391_v17 = vpop.f32.mrb[1].mxu0 }
  0xdb   :  { %v83_v18 = vpop.f32.mrb[2].mxu0 }
  0xdc   :  { %v345_v19 = vmul.f32 -1.442695, %v81_v16  ;;  %v84_v20 = vadd.f32 %v343_v14, %v83_v18  ;;  %v392_v21 = vpop.f32.mrb[3].mxu0 }
  0xde   :  { %451 = vpow2.f32 %v345_v19  ;;  %v346_v22 = vmul.f32 -1.442695, %v84_v20 }
  0xe0   :  { %453 = vpow2.f32 %v346_v22 }
  0xe8   :  { %v452_v23 = vpop.eup %451 }
  0xe9   :  { %v93_v24 = vadd.f32 1.0, %v452_v23 }
  0xea   :  { %v454_v25 = vpop.eup %453 }
  0xeb   :  { %v94_v26 = vadd.f32 1.0, %v454_v25  ;;  %455 = vrcp.f32 %v93_v24 }
  0xed   :  { %457 = vrcp.f32 %v94_v26 }
  0xf5   :  { %v456_v27 = vpop.eup %455 }
  0xf7   :  { %v458_v28 = vpop.eup %457 }
  0xf8   :  { %v99_v29 = vpack.c.bf16 %v458_v28, %v456_v27 }
  0xfa   :  { %410 = vmatmul.mubr.bf16.vlgmr.msra.gmra.mrb[0].mxu1 %v99_v29 }
 0x1cd   :  { %v205_v39 = vpop.f32.mrb[0].mxu1 }
 0x1ce   :  { %v206_v40 = vadd.f32 %v347_v38, %v205_v39  ;;  %v411_v41 = vpop.f32.mrb[1].mxu1 }
 0x1cf   :  { %v208_v42 = vpop.f32.mrb[2].mxu1 }
 0x1d0   :  { %v356_v43 = vmul.f32 -1.442695, %v206_v40  ;;  %v209_v44 = vadd.f32 %v347_v38, %v208_v42  ;;  %v412_v45 = vpop.f32.mrb[3].mxu1 }
 0x1d2   :  { %459 = vpow2.f32 %v356_v43  ;;  %v357_v46 = vmul.f32 -1.442695, %v209_v44 }
 0x1d4   :  { %461 = vpow2.f32 %v357_v46 }
 0x1dc   :  { %v460_v47 = vpop.eup %459 }
 0x1dd   :  { %v218_v48 = vadd.f32 1.0, %v460_v47 }
 0x1de   :  { %v462_v49 = vpop.eup %461 }
 0x1df   :  { %v219_v50 = vadd.f32 1.0, %v462_v49  ;;  %463 = vrcp.f32 %v218_v48 }
 0x1e1   :  { %465 = vrcp.f32 %v219_v50 }
 0x1e9   :  { %v464_v51 = vpop.eup %463 }
 0x1eb   :  { %v466_v52 = vpop.eup %465 }
 0x1ec   :  { %v224_v53 = vpack.c.bf16 %v466_v52, %v464_v51 }
 0x1ee   :  { %430 = vmatmul.mubr.bf16.vlgmr.msra.gmra.mrb[4].mxu0 %v224_v53 }
 0x2c1   :  { %v330_v55 = vpop.f32.mrb[4].mxu0 }
 0x2c2   :  { %v331_v56 = vadd.f32 %v358_v54, %v330_v55  ;;  %v431_v57 = vpop.f32.mrb[5].mxu0 }
 0x2c3   :  { %v333_v58 = vpop.f32.mrb[6].mxu0 }
 0x2c4   :  { %337 = vst.msk [vmem:[%s611_s7] sm:$0xff] %vm38_vm2, %v331_v56  ;;  %v334_v59 = vadd.f32 %v358_v54, %v333_v58  ;;  %v432_v60 = vpop.f32.mrb[7].mxu0 }
 0x2c6   :  { %338 = vst.msk [vmem:[%s611_s7 + $0x8] sm:$0xff] %vm38_vm2, %v334_v59 }

</bundles_post_ra>
